<compile_context>
chip_gen: v7x
topology: tpu7x:2x2x1
jax: 0.10.0
libtpu: 0.0.40
codegen_flags: <defaults>
</compile_context>

<pallas_src>
import math

import jax
import jax.numpy as jnp
from jax.experimental import pallas as pl
from jax.experimental.pallas import tpu as pltpu


_LANE = 128
_MAX_LANES = 1024               # lane-dense slab width cap (multiple of 128)
_TILE_BYTE_CAP = 2 * 1024 * 1024  # per-tile cap: fits v5e 16MiB / v7x 64MiB VMEM with multi-buffering


def _copy_kernel(x_ref, o_ref):
    # Squeeze has no arithmetic; the kernel is a straight tile copy.
    o_ref[...] = x_ref[...]


def _squeezed_shape(shape, axes):
    """torch.squeeze(dim) semantics: drop listed dims only if they are size 1."""
    ndim = len(shape)
    if ndim == 0:
        return ()
    if isinstance(axes, int):
        axes = (axes,)
    norm = set()
    for a in axes:
        if not (-ndim <= a < ndim):
            raise ValueError(f"axis {a} out of range for tensor of rank {ndim}")
        norm.add(a % ndim)
    return tuple(d for i, d in enumerate(shape) if not (i in norm and d == 1))


def _pick_layout(total, last_dim, itemsize):
    """Choose a lane-dense (m, n) slab and a row tile tm."""
    if total % _LANE == 0:
        n = _LANE
        while n * 2 <= _MAX_LANES and total % (n * 2) == 0:
            n *= 2
    else:
        # Fallback: original last dim as lane axis (block == full dims is legal).
        n = max(last_dim, 1)
    m = total // n

    max_rows = max(8, _TILE_BYTE_CAP // max(1, n * itemsize))
    tm = None
    for cand in (1024, 512, 256, 128, 64, 32, 16, 8):
        if cand <= max_rows and m % cand == 0:
            tm = cand
            break
    if tm is None:
        if m <= max_rows:
            tm = m  # full row extent in one block (legal even if not 8-aligned)
        else:
            # Uneven tiling; Pallas clamps/masks the boundary block.
            tm = max(8, (min(512, max_rows) // 8) * 8)
    return m, n, tm


def squeezer(x, axes, *, donate_input=False):
    """Pallas implementation of Squeezer(axes).forward(x)."""
    out_shape = _squeezed_shape(x.shape, axes)
    total = math.prod(x.shape) if x.ndim > 0 else 1

    if x.ndim == 0 or total == 0:
        # Nothing to copy; metadata-only result.
        return jnp.reshape(x, out_shape)

    itemsize = jnp.dtype(x.dtype).itemsize
    m, n, tm = _pick_layout(total, x.shape[-1], itemsize)

    x2d = x.reshape(m, n)
    grid_m = pl.cdiv(m, tm)
    n_buf = 3 if grid_m >= 3 else 2  # triple-buffer only when there is work to overlap

    extra_kwargs = {}
    if donate_input:
        # In-place copy (halves peak HBM footprint); caller should donate x.
        extra_kwargs["input_output_aliases"] = {0: 0}

    out2d = pl.pallas_call(
        _copy_kernel,
        out_shape=jax.ShapeDtypeStruct((m, n), x.dtype),
        grid=(grid_m,),
        in_specs=[
            pl.BlockSpec((tm, n), lambda i: (i, 0), pipeline_mode=pl.Buffered(n_buf))
        ],
        out_specs=pl.BlockSpec((tm, n), lambda i: (i, 0)),
        compiler_params=pltpu.CompilerParams(
            # "parallel": shard the row tiles across the 2 TCs on v7x (no-op on v5e/v6e).
            dimension_semantics=("parallel",),
            # Raise v5e's 16 MiB scoped default; 32 MiB is the default (and safe) on v6e/v7x.
            vmem_limit_bytes=32 * 1024 * 1024,
        ),
        **extra_kwargs,
    )(x2d)

    # Metadata-only reshape to the squeezed shape (glue, not compute).
    return out2d.reshape(out_shape)


if __name__ == "__main__":
    key = jax.random.PRNGKey(0)

    # Small NCHW-style input with a singleton axis to squeeze: (2, 4, 1, 16, 16)
    x = jax.random.normal(key, (2, 4, 1, 16, 16), dtype=jnp.float32)
    y = squeezer(x, 2)
    jax.block_until_ready(y)
    y_ref = jnp.squeeze(x, axis=2)
    assert y.shape == (2, 4, 16, 16), y.shape
    assert y.dtype == x.dtype
    assert jnp.array_equal(y, y_ref)

    # torch semantics: squeezing a non-singleton dim is a no-op on that dim.
    y_noop = squeezer(x, 1)
    jax.block_until_ready(y_noop)
    assert y_noop.shape == x.shape
    assert jnp.array_equal(y_noop, x)

    # Tuple axes + total not divisible by 128 (exercises the fallback layout).
    x2 = jax.random.normal(jax.random.PRNGKey(0), (2, 1, 3, 5), dtype=jnp.float32)
    y2 = squeezer(x2, (1, -4))
    jax.block_until_ready(y2)
    assert y2.shape == (2, 3, 5), y2.shape
    assert jnp.array_equal(y2, jnp.squeeze(x2, axis=1))

    print("KERNEL_OK")
</pallas_src>

<mosaic_0001>
module attributes {stable_mosaic.version = 11 : i64} {
  func.func @_copy_kernel(%arg0: i32, %arg1: memref<2x1024xf32, #tpu.memory_space<vmem>>, %arg2: memref<2x1024xf32, #tpu.memory_space<vmem>>) attributes {dimension_semantics = [#tpu.dimension_semantics<parallel>], iteration_bounds = array<i64: 1>, scalar_prefetch = 0 : i64, scratch_operands = 0 : i64, tpu.core_type = #tpu.core_type<tc>, window_params = [{pipeline_mode = #tpu.pipeline_mode<double_buffered>, transform_indices = @transform_0, window_bounds = array<i64: 2, 1024>}, {transform_indices = @transform_1, window_bounds = array<i64: 2, 1024>}]} {
    %c0 = arith.constant 0 : index
    %c0_0 = arith.constant 0 : index
    %0 = vector.load %arg1[%c0, %c0_0] : memref<2x1024xf32, #tpu.memory_space<vmem>>, vector<2x1024xf32>
    %c0_1 = arith.constant 0 : index
    %c0_2 = arith.constant 0 : index
    %1 = vector.load %arg2[%c0_1, %c0_2] : memref<2x1024xf32, #tpu.memory_space<vmem>>, vector<2x1024xf32>
    tpu.vector_store %arg2[%c0_1, %c0_2], %0 {strides = array<i32>} : memref<2x1024xf32, #tpu.memory_space<vmem>>, vector<2x1024xf32>,
    return
  }
  func.func @transform_0(%arg0: i32) -> (i32, i32) {
    %c0_i32 = arith.constant 0 : i32
    %c0_i32_0 = arith.constant 0 : i32
    return %arg0, %c0_i32 : i32, i32
  }
  func.func @transform_1(%arg0: i32) -> (i32, i32) {
    %c0_i32 = arith.constant 0 : i32
    %c0_i32_0 = arith.constant 0 : i32
    return %arg0, %c0_i32 : i32, i32
  }
}

</mosaic_0001>

<bundles_post_ra>
// kernel: tpu_custom_call.1
= control target key start
LH: loop header
LB: loop body
LE: loop exit
PB: predicated region body
PF: predicated region fallthrough
CT: control target
= control target key end

     0   :  { %6 = vsyncpa [#allocation3], 0  ;;  %s126_s0 = inlined_call_operand.hbm [shape: f32[2,1024], index: 0, kind: input, shape index: {}]   ;;  %s127_s1 = inlined_call_operand.hbm [shape: f32[2,1024], index: 1, kind: output, shape index: {}]  }
   0x1   :  { %7 = vsyncpa [#allocation4], 0  ;;  %s90_s6 = smov [#allocation2]   ;;  %s42_s10 = scalar_lea.hbm %s126_s0, 256 }
   0x2   :  { %s14_s7 = sshll.u32 %s90_s6, 4  ;;  %p43_p0 = scmp.ne.s32.totalorder %s126_s0, %s42_s10  ;;  %s15_s7 = int_to_ptr.vmem [resolvable:$true] %s14_s7 }
   0x3   :  { %p46_p1 = scmp.lt.u32.totalorder %s42_s10, %s126_s0 }
   0x5   :  { %p48_p2 = pnand %p46_p1, %p43_p0 }
   0x7   :  { %51 = shalt.err (!%p48_p2)
}
   0x8   :  { %s52_s15 = scalar_lea.vmem %s15_s7, 256  ;;  %p57_p4 = scmp.lt.s32.totalorder %s15_s7, %s15_s7 }
   0x9   :  { %p53_p3 = scmp.ne.s32.totalorder %s15_s7, %s52_s15  ;;  %p58_p5 = scmp.lt.s32.totalorder %s52_s15, %s52_s15 }
   0xb   :  { %p59_p6 = por %p58_p5, %p57_p4 }
   0xd   :  { %p60_p7 = pnand %p59_p6, %p53_p3 }
   0xf   :  { %63 = shalt.err (!%p60_p7)
}
  0x10   :  { %17 = dma.hbm_to_vmem [thread:$0]  %s126_s0, 256, %s15_s7, [#allocation3]  }
  0x11   :  { %86 = dma.done.wait [#allocation3], 256  }
  0x12   :  { %87 = vsyncadd [#allocation3], 4294967040  ;;  %s91_s18 = smov [#allocation5]   ;;  %v21_v0 = vld [vmem:[#allocation2] sm:$0xff]  ;;  %v22_v1 = vld [vmem:[#allocation2 + $0x8] sm:$0xff] }
  0x13   :  { %s31_s19 = sshll.u32 %s91_s18, 4  ;;  %23 = vst [vmem:[#allocation5] sm:$0xff] %v21_v0  ;;  %24 = vst [vmem:[#allocation5 + $0x8] sm:$0xff] %v22_v1  ;;  %s32_s19 = int_to_ptr.vmem [resolvable:$true] %s31_s19 }
  0x14   :  { %s64_s20 = scalar_lea.vmem %s32_s19, 256  ;;  %p69_p9 = scmp.lt.s32.totalorder %s32_s19, %s32_s19 }
  0x15   :  { %p65_p8 = scmp.ne.s32.totalorder %s32_s19, %s64_s20  ;;  %p70_p10 = scmp.lt.s32.totalorder %s64_s20, %s64_s20 }
  0x17   :  { %p71_p11 = por %p70_p10, %p69_p9 }
  0x19   :  { %p72_p12 = pnand %p71_p11, %p65_p8 }
  0x1b   :  { %75 = shalt.err (!%p72_p12)
}
  0x1c   :  { %s76_s0 = scalar_lea.hbm %s127_s1, 256 }
  0x1d   :  { %p77_p13 = scmp.ne.s32.totalorder %s127_s1, %s76_s0  ;;  %p80_p0 = scmp.lt.u32.totalorder %s76_s0, %s127_s1 }
  0x1f   :  { %p82_p1 = pnand %p80_p0, %p77_p13 }
  0x21   :  { %85 = shalt.err (!%p82_p1)
}
  0x22   :  { %34 = dma.vmem_to_hbm [thread:$0]  %s32_s19, 256, %s127_s1, [#allocation4]  }
  0x23   :  { %88 = dma.done.wait [#allocation4], 256  }
  0x24   :  { %89 = vsyncadd [#allocation4], 4294967040 }
  0x25   :  { %38 = vsyncpa [#allocation3], 1 }
  0x26   :  { %39 = vsyncpa [#allocation4], 1 }

</bundles_post_ra>
